<compile_context>
chip_gen: v7x
topology: tpu7x:2x2x1
jax: 0.10.0
libtpu: 0.0.40
codegen_flags: <defaults>
</compile_context>

<pallas_src>
import functools

import jax
import jax.numpy as jnp
from jax.experimental import pallas as pl
from jax.experimental.pallas import tpu as pltpu


def _lenet_trunk_kernel(x_ref, w1_ref, s1_ref, b1_ref, sel1_ref,
                        w2_ref, s2_ref, b2_ref, sel2_ref,
                        wf_ref, bf_ref, o_ref, xpad_ref, *, bsz, h, w):
    f32 = jnp.float32
    xw = x_ref.shape[-1]            # w * cin   (pixel-major row)
    hp = h // 2                     # rows after pool1
    ho2 = hp - 4                    # conv2 output rows
    ph2 = ho2 // 2                  # rows after pool2

    # ---- stage input with a 2-row top/bottom halo (width pad is in W1) -----
    xpad_ref[:, 0:2, :] = jnp.zeros((bsz, 2, xw), f32)
    xpad_ref[:, h + 2:h + 4, :] = jnp.zeros((bsz, 2, xw), f32)
    xpad_ref[:, 2:2 + h, :] = x_ref[...].astype(f32)

    # ---- conv1 (5x5, pad 2): 5 shifted-row MXU matmuls, banded weights -----
    c1w = w1_ref.shape[-1]          # c1 * w  (channel-major output row)
    acc1 = jnp.zeros((bsz * h, c1w), f32)
    for kh in range(5):
        lhs = xpad_ref[:, kh:kh + h, :].reshape(bsz * h, xw)
        acc1 = acc1 + jnp.dot(lhs, w1_ref[kh], preferred_element_type=f32)
    y1 = jnp.maximum(acc1 * s1_ref[...] + b1_ref[...], 0.0)       # BN1 + ReLU

    # ---- MaxPool2d(2): rows via reshape+max, cols via selection matmuls ----
    r1 = jnp.max(y1.reshape(bsz * hp, 2, c1w), axis=1)            # (bsz*hp, c1*w)
    p1 = jnp.maximum(jnp.dot(r1, sel1_ref[0], preferred_element_type=f32),
                     jnp.dot(r1, sel1_ref[1], preferred_element_type=f32))
    p1 = p1.reshape(bsz, hp, p1.shape[-1])                        # (bsz, hp, c1*wp)

    # ---- conv2 (5x5, valid): 5 shifted-row MXU matmuls ----------------------
    c2w = w2_ref.shape[-1]          # c2 * wo2 (channel-major output row)
    acc2 = jnp.zeros((bsz * ho2, c2w), f32)
    for kh in range(5):
        lhs = p1[:, kh:kh + ho2, :].reshape(bsz * ho2, p1.shape[-1])
        acc2 = acc2 + jnp.dot(lhs, w2_ref[kh], preferred_element_type=f32)
    y2 = jnp.maximum(acc2 * s2_ref[...] + b2_ref[...], 0.0)       # BN2 + ReLU

    # ---- MaxPool2d(2) + AdaptiveAvgPool2d(1) + folded fc --------------------
    r2 = jnp.max(y2.reshape(bsz * ph2, 2, c2w), axis=1)           # (bsz*ph2, c2*wo2)
    m2 = jnp.maximum(jnp.dot(r2, sel2_ref[0], preferred_element_type=f32),
                     jnp.dot(r2, sel2_ref[1], preferred_element_type=f32))
    t = jnp.sum(m2.reshape(bsz, ph2, m2.shape[-1]), axis=1)       # (bsz, c2*pw2)
    # wf already folds the avg-pool 1/(ph*pw), the per-channel spatial sum and
    # the collapsed fc1->fc2 linear; bf folds both fc biases.
    out = jnp.dot(t, wf_ref[...], preferred_element_type=f32) + bf_ref[...]
    o_ref[...] = out.reshape(bsz, 1, out.shape[-1]).astype(o_ref.dtype)


def _banded_conv_weight(w_oihw, w_in, *, pad, channel_major_in):
    """Expand an OIHW 5x5 conv kernel into 5 banded matrices so that the conv
    over the width axis becomes a plain matmul per kernel row kh.

    Returns (5, cin*w_in, cout*w_out) with w_out = w_in + 2*pad - 4.  Output
    columns are channel-major (co*w_out + jout); input rows are pixel-major
    (jin*cin + ci) or channel-major (ci*w_in + jin)."""
    cout, cin, kh, kw = w_oihw.shape
    assert kh == 5 and kw == 5
    w_out = w_in + 2 * pad - 4
    jin = jnp.arange(w_in)
    jout = jnp.arange(w_out)
    d = jin[:, None] - jout[None, :] + pad                     # tap index kw
    valid = ((d >= 0) & (d < 5)).astype(w_oihw.dtype)
    taps = w_oihw[:, :, :, jnp.clip(d, 0, 4)] * valid          # (co,ci,5,w_in,w_out)
    if channel_major_in:
        t = jnp.transpose(taps, (2, 1, 3, 0, 4))               # (kh, ci, jin, co, jout)
    else:
        t = jnp.transpose(taps, (2, 3, 1, 0, 4))               # (kh, jin, ci, co, jout)
    return t.reshape(5, cin * w_in, cout * w_out)


def _pool_selectors(c, w_in):
    """0/1 matrices (2, c*w_in, c*(w_in//2)) picking the even / odd column of
    each width pair inside every channel block, so the width-halving max-pool
    is max(x @ sel[0], x @ sel[1]) on the MXU (no strided lane ops)."""
    w_out = w_in // 2
    ch = jnp.repeat(jnp.arange(c), w_out)
    jo = jnp.tile(jnp.arange(w_out), c)
    cols = jnp.arange(c * w_out)
    sel = jnp.zeros((2, c * w_in, c * w_out), jnp.float32)
    sel = sel.at[0, ch * w_in + 2 * jo, cols].set(1.0)
    sel = sel.at[1, ch * w_in + 2 * jo + 1, cols].set(1.0)
    return sel


def lenet_backbone_forward(x_nchw, params, *, eps=1e-5, max_block=8):
    (w_c1, b_c1, g1, be1, rm1, rv1,
     w_c2, b_c2, g2, be2, rm2, rv2,
     w_f1, b_f1, w_f2, b_f2) = params

    n, cin, h, w = x_nchw.shape
    c1, c2 = w_c1.shape[0], w_c2.shape[0]
    f_out = w_f2.shape[0]
    assert w_c1.shape[1:] == (cin, 5, 5) and w_c2.shape[1:] == (c1, 5, 5)
    assert h % 2 == 0 and w % 2 == 0, "H and W must be even (MaxPool2d(2))"
    hp, wp = h // 2, w // 2
    ho2, wo2 = hp - 4, wp - 4
    assert ho2 >= 2 and wo2 >= 2 and ho2 % 2 == 0 and wo2 % 2 == 0, (
        "need (H//2 - 4) and (W//2 - 4) even and >= 2 for the second pool")
    ph2, pw2 = ho2 // 2, wo2 // 2

    # Batch block: largest divisor of n <= max_block that keeps >= 2 grid
    # steps (both v7x TensorCores get work; harmless on single-TC v5e/v6e).
    bsz = 1
    for b in range(1, min(max_block, n) + 1):
        if n % b == 0 and (n // b >= 2 or n == 1):
            bsz = b
    grid = (n // bsz,)

    # Lane-dense input rows (N, H, W*Cin); single NCHW->row transform.
    x_rows = jnp.transpose(x_nchw, (0, 2, 3, 1)).reshape(n, h, w * cin)
    x_rows = x_rows.astype(jnp.float32)

    # Fold inference-mode BN (+ conv bias) into per-channel scale/bias, tiled
    # to the channel-major row layout of each conv's output.
    s1 = g1 / jnp.sqrt(rv1 + eps)
    s2 = g2 / jnp.sqrt(rv2 + eps)
    s1_row = jnp.repeat(s1, w).reshape(1, c1 * w).astype(jnp.float32)
    b1_row = jnp.repeat(be1 + (b_c1 - rm1) * s1, w).reshape(1, c1 * w).astype(jnp.float32)
    s2_row = jnp.repeat(s2, wo2).reshape(1, c2 * wo2).astype(jnp.float32)
    b2_row = jnp.repeat(be2 + (b_c2 - rm2) * s2, wo2).reshape(1, c2 * wo2).astype(jnp.float32)

    # Banded (Toeplitz-over-width) conv weights: conv == 5 shifted-row matmuls.
    w1_band = _banded_conv_weight(w_c1, w, pad=2, channel_major_in=False).astype(jnp.float32)
    w2_band = _banded_conv_weight(w_c2, wp, pad=0, channel_major_in=True).astype(jnp.float32)

    # Width-halving max-pool selection matrices.
    sel1 = _pool_selectors(c1, w)
    sel2 = _pool_selectors(c2, wo2)

    # fc2(fc1(.)) has no intermediate nonlinearity -> collapse to one linear,
    # folding the adaptive-avg-pool mean and the per-channel spatial sum in.
    w_fold = (w_f2 @ w_f1).T                                        # (c2, f_out)
    b_fold = (w_f2 @ b_f1 + b_f2).reshape(1, f_out).astype(jnp.float32)
    wf = (jnp.repeat(w_fold, pw2, axis=0) / float(ph2 * pw2)).astype(jnp.float32)

    kernel = functools.partial(_lenet_trunk_kernel, bsz=bsz, h=h, w=w)
    out = pl.pallas_call(
        kernel,
        out_shape=jax.ShapeDtypeStruct((n, 1, f_out), jnp.float32),
        grid_spec=pltpu.PrefetchScalarGridSpec(
            num_scalar_prefetch=0,
            grid=grid,
            in_specs=[
                pl.BlockSpec((bsz, h, w * cin), lambda i: (i, 0, 0)),       # x rows
                pl.BlockSpec((5, w * cin, c1 * w), lambda i: (0, 0, 0)),    # conv1 bands
                pl.BlockSpec((1, c1 * w), lambda i: (0, 0)),                # bn1 scale
                pl.BlockSpec((1, c1 * w), lambda i: (0, 0)),                # bn1 bias
                pl.BlockSpec((2, c1 * w, c1 * wp), lambda i: (0, 0, 0)),    # pool1 sel
                pl.BlockSpec((5, c1 * wp, c2 * wo2), lambda i: (0, 0, 0)),  # conv2 bands
                pl.BlockSpec((1, c2 * wo2), lambda i: (0, 0)),              # bn2 scale
                pl.BlockSpec((1, c2 * wo2), lambda i: (0, 0)),              # bn2 bias
                pl.BlockSpec((2, c2 * wo2, c2 * pw2), lambda i: (0, 0, 0)), # pool2 sel
                pl.BlockSpec((c2 * pw2, f_out), lambda i: (0, 0)),          # folded fc W
                pl.BlockSpec((1, f_out), lambda i: (0, 0)),                 # folded fc b
            ],
            out_specs=pl.BlockSpec((bsz, 1, f_out), lambda i: (i, 0, 0)),
            scratch_shapes=[pltpu.VMEM((bsz, h + 4, w * cin), jnp.float32)],
        ),
        compiler_params=pltpu.CompilerParams(
            dimension_semantics=("parallel",)),
    )(x_rows, w1_band, s1_row, b1_row, sel1,
      w2_band, s2_row, b2_row, sel2, wf, b_fold)
    return out.reshape(n, f_out)


def _reference(x_nchw, params, *, eps=1e-5):
    """Pure-JAX reference of the same (eval-mode BN) forward pass."""
    (w_c1, b_c1, g1, be1, m1, v1,
     w_c2, b_c2, g2, be2, m2, v2,
     w_f1, b_f1, w_f2, b_f2) = params

    def bn(y, g, b, m, v):
        return ((y - m[None, :, None, None])
                / jnp.sqrt(v[None, :, None, None] + eps)
                * g[None, :, None, None] + b[None, :, None, None])

    y = jax.lax.conv_general_dilated(
        x_nchw, w_c1, (1, 1), ((2, 2), (2, 2)),
        dimension_numbers=("NCHW", "OIHW", "NCHW"),
        precision=jax.lax.Precision.HIGHEST)
    y = jnp.maximum(bn(y + b_c1[None, :, None, None], g1, be1, m1, v1), 0.0)
    y = jax.lax.reduce_window(y, -jnp.inf, jax.lax.max,
                              (1, 1, 2, 2), (1, 1, 2, 2), "VALID")

    z = jax.lax.conv_general_dilated(
        y, w_c2, (1, 1), ((0, 0), (0, 0)),
        dimension_numbers=("NCHW", "OIHW", "NCHW"),
        precision=jax.lax.Precision.HIGHEST)
    z = jnp.maximum(bn(z + b_c2[None, :, None, None], g2, be2, m2, v2), 0.0)
    z = jax.lax.reduce_window(z, -jnp.inf, jax.lax.max,
                              (1, 1, 2, 2), (1, 1, 2, 2), "VALID")

    f = jnp.mean(z, axis=(2, 3))                                    # (N, 16)
    h1 = f @ w_f1.T + b_f1
    return h1 @ w_f2.T + b_f2


if __name__ == "__main__":
    N, CIN, H, W = 2, 3, 16, 16
    C1, C2, F1, F2 = 6, 16, 256, 64

    key = jax.random.PRNGKey(0)
    ks = jax.random.split(key, 17)

    x = jax.random.normal(ks[0], (N, CIN, H, W), dtype=jnp.float32)

    w_c1 = 0.2 * jax.random.normal(ks[1], (C1, CIN, 5, 5), dtype=jnp.float32)
    b_c1 = 0.1 * jax.random.normal(ks[2], (C1,), dtype=jnp.float32)
    g1 = 1.0 + 0.1 * jax.random.normal(ks[3], (C1,), dtype=jnp.float32)
    be1 = 0.1 * jax.random.normal(ks[4], (C1,), dtype=jnp.float32)
    m1 = 0.05 * jax.random.normal(ks[5], (C1,), dtype=jnp.float32)
    v1 = 1.0 + 0.1 * jax.random.uniform(ks[6], (C1,), dtype=jnp.float32)

    w_c2 = 0.2 * jax.random.normal(ks[7], (C2, C1, 5, 5), dtype=jnp.float32)
    b_c2 = 0.1 * jax.random.normal(ks[8], (C2,), dtype=jnp.float32)
    g2 = 1.0 + 0.1 * jax.random.normal(ks[9], (C2,), dtype=jnp.float32)
    be2 = 0.1 * jax.random.normal(ks[10], (C2,), dtype=jnp.float32)
    m2 = 0.05 * jax.random.normal(ks[11], (C2,), dtype=jnp.float32)
    v2 = 1.0 + 0.1 * jax.random.uniform(ks[12], (C2,), dtype=jnp.float32)

    w_f1 = 0.2 * jax.random.normal(ks[13], (F1, C2), dtype=jnp.float32)
    b_f1 = 0.1 * jax.random.normal(ks[14], (F1,), dtype=jnp.float32)
    w_f2 = 0.2 * jax.random.normal(ks[15], (F2, F1), dtype=jnp.float32)
    b_f2 = 0.1 * jax.random.normal(ks[16], (F2,), dtype=jnp.float32)

    params = (w_c1, b_c1, g1, be1, m1, v1,
              w_c2, b_c2, g2, be2, m2, v2,
              w_f1, b_f1, w_f2, b_f2)

    fwd = jax.jit(lenet_backbone_forward)
    out = jax.block_until_ready(fwd(x, params))

    ref = _reference(x, params)
    assert out.shape == (N, F2), out.shape
    max_err = float(jnp.max(jnp.abs(out - ref)))
    assert jnp.allclose(out, ref, atol=5e-3, rtol=5e-3), max_err

    print("KERNEL_OK")
</pallas_src>

<mosaic_0001>
module attributes {stable_mosaic.version = 11 : i64} {
  func.func @_lenet_trunk_kernel(%arg0: i32, %arg1: memref<1x16x48xf32, #tpu.memory_space<vmem>>, %arg2: memref<5x48x96xf32, #tpu.memory_space<vmem>>, %arg3: memref<1x96xf32, #tpu.memory_space<vmem>>, %arg4: memref<1x96xf32, #tpu.memory_space<vmem>>, %arg5: memref<2x96x48xf32, #tpu.memory_space<vmem>>, %arg6: memref<5x48x64xf32, #tpu.memory_space<vmem>>, %arg7: memref<1x64xf32, #tpu.memory_space<vmem>>, %arg8: memref<1x64xf32, #tpu.memory_space<vmem>>, %arg9: memref<2x64x32xf32, #tpu.memory_space<vmem>>, %arg10: memref<32x64xf32, #tpu.memory_space<vmem>>, %arg11: memref<1x64xf32, #tpu.memory_space<vmem>>, %arg12: memref<1x1x64xf32, #tpu.memory_space<vmem>>, %arg13: memref<1x20x48xf32, #tpu.memory_space<vmem>>) attributes {dimension_semantics = [#tpu.dimension_semantics<parallel>], iteration_bounds = array<i64: 2>, scalar_prefetch = 0 : i64, scratch_operands = 1 : i64, tpu.core_type = #tpu.core_type<tc>, window_params = [{transform_indices = @transform_0, window_bounds = array<i64: 1, 16, 48>}, {pipeline_mode = #tpu.pipeline_mode<synchronous>, transform_indices = @transform_1, window_bounds = array<i64: 5, 48, 96>}, {pipeline_mode = #tpu.pipeline_mode<synchronous>, transform_indices = @transform_2, window_bounds = array<i64: 1, 96>}, {pipeline_mode = #tpu.pipeline_mode<synchronous>, transform_indices = @transform_3, window_bounds = array<i64: 1, 96>}, {pipeline_mode = #tpu.pipeline_mode<synchronous>, transform_indices = @transform_4, window_bounds = array<i64: 2, 96, 48>}, {pipeline_mode = #tpu.pipeline_mode<synchronous>, transform_indices = @transform_5, window_bounds = array<i64: 5, 48, 64>}, {pipeline_mode = #tpu.pipeline_mode<synchronous>, transform_indices = @transform_6, window_bounds = array<i64: 1, 64>}, {pipeline_mode = #tpu.pipeline_mode<synchronous>, transform_indices = @transform_7, window_bounds = array<i64: 1, 64>}, {pipeline_mode = #tpu.pipeline_mode<synchronous>, transform_indices = @transform_8, window_bounds = array<i64: 2, 64, 32>}, {pipeline_mode = #tpu.pipeline_mode<synchronous>, transform_indices = @transform_9, window_bounds = array<i64: 32, 64>}, {pipeline_mode = #tpu.pipeline_mode<synchronous>, transform_indices = @transform_10, window_bounds = array<i64: 1, 64>}, {transform_indices = @transform_11, window_bounds = array<i64: 1, 1, 64>}]} {
    %cst = arith.constant 0.000000e+00 : f32
    %0 = vector.broadcast %cst : f32 to vector<1x2x48xf32>
    %c0 = arith.constant 0 : index
    %c0_0 = arith.constant 0 : index
    %c0_1 = arith.constant 0 : index
    %1 = vector.load %arg13[%c0, %c0_0, %c0_1] : memref<1x20x48xf32, #tpu.memory_space<vmem>>, vector<1x2x48xf32>
    tpu.vector_store %arg13[%c0, %c0_0, %c0_1], %0 {strides = array<i32>} : memref<1x20x48xf32, #tpu.memory_space<vmem>>, vector<1x2x48xf32>,
    %cst_2 = arith.constant 0.000000e+00 : f32
    %2 = vector.broadcast %cst_2 : f32 to vector<1x2x48xf32>
    %c0_3 = arith.constant 0 : index
    %c18 = arith.constant 18 : index
    %c0_4 = arith.constant 0 : index
    %3 = vector.load %arg13[%c0_3, %c18, %c0_4] : memref<1x20x48xf32, #tpu.memory_space<vmem>>, vector<1x2x48xf32>
    tpu.vector_store %arg13[%c0_3, %c18, %c0_4], %2 {strides = array<i32>} : memref<1x20x48xf32, #tpu.memory_space<vmem>>, vector<1x2x48xf32>,
    %c0_5 = arith.constant 0 : index
    %c0_6 = arith.constant 0 : index
    %c0_7 = arith.constant 0 : index
    %4 = vector.load %arg1[%c0_5, %c0_6, %c0_7] : memref<1x16x48xf32, #tpu.memory_space<vmem>>, vector<1x16x48xf32>
    %c0_8 = arith.constant 0 : index
    %c2 = arith.constant 2 : index
    %c0_9 = arith.constant 0 : index
    %5 = vector.load %arg13[%c0_8, %c2, %c0_9] : memref<1x20x48xf32, #tpu.memory_space<vmem>>, vector<1x16x48xf32>
    tpu.vector_store %arg13[%c0_8, %c2, %c0_9], %4 {strides = array<i32>} : memref<1x20x48xf32, #tpu.memory_space<vmem>>, vector<1x16x48xf32>,
    %cst_10 = arith.constant 0.000000e+00 : f32
    %6 = vector.broadcast %cst_10 : f32 to vector<16x96xf32>
    %c0_11 = arith.constant 0 : index
    %c0_12 = arith.constant 0 : index
    %c0_13 = arith.constant 0 : index
    %7 = vector.load %arg13[%c0_11, %c0_12, %c0_13] : memref<1x20x48xf32, #tpu.memory_space<vmem>>, vector<1x16x48xf32>
    %8 = vector.shape_cast %7 : vector<1x16x48xf32> to vector<16x48xf32>
    %c0_14 = arith.constant 0 : index
    %c0_15 = arith.constant 0 : index
    %c0_16 = arith.constant 0 : index
    %9 = vector.load %arg2[%c0_14, %c0_15, %c0_16] : memref<5x48x96xf32, #tpu.memory_space<vmem>>, vector<1x48x96xf32>
    %10 = vector.shape_cast %9 : vector<1x48x96xf32> to vector<48x96xf32>
    %cst_17 = arith.constant dense<0.000000e+00> : vector<16x96xf32>
    %11 = tpu.matmul %8, %10, %cst_17 {dimension_numbers = #tpu.dot_dimension_numbers<[1], [0], [0], [1], [0, 0, 1, 1], [], []>} : vector<16x48xf32>, vector<48x96xf32>, vector<16x96xf32> -> vector<16x96xf32>
    %12 = arith.addf %6, %11 : vector<16x96xf32>
    %c0_18 = arith.constant 0 : index
    %c1 = arith.constant 1 : index
    %c0_19 = arith.constant 0 : index
    %13 = vector.load %arg13[%c0_18, %c1, %c0_19] : memref<1x20x48xf32, #tpu.memory_space<vmem>>, vector<1x16x48xf32>
    %14 = vector.shape_cast %13 : vector<1x16x48xf32> to vector<16x48xf32>
    %c1_20 = arith.constant 1 : index
    %c0_21 = arith.constant 0 : index
    %c0_22 = arith.constant 0 : index
    %15 = vector.load %arg2[%c1_20, %c0_21, %c0_22] : memref<5x48x96xf32, #tpu.memory_space<vmem>>, vector<1x48x96xf32>
    %16 = vector.shape_cast %15 : vector<1x48x96xf32> to vector<48x96xf32>
    %cst_23 = arith.constant dense<0.000000e+00> : vector<16x96xf32>
    %17 = tpu.matmul %14, %16, %cst_23 {dimension_numbers = #tpu.dot_dimension_numbers<[1], [0], [0], [1], [0, 0, 1, 1], [], []>} : vector<16x48xf32>, vector<48x96xf32>, vector<16x96xf32> -> vector<16x96xf32>
    %18 = arith.addf %12, %17 : vector<16x96xf32>
    %c0_24 = arith.constant 0 : index
    %c2_25 = arith.constant 2 : index
    %c0_26 = arith.constant 0 : index
    %19 = vector.load %arg13[%c0_24, %c2_25, %c0_26] : memref<1x20x48xf32, #tpu.memory_space<vmem>>, vector<1x16x48xf32>
    %20 = vector.shape_cast %19 : vector<1x16x48xf32> to vector<16x48xf32>
    %c2_27 = arith.constant 2 : index
    %c0_28 = arith.constant 0 : index
    %c0_29 = arith.constant 0 : index
    %21 = vector.load %arg2[%c2_27, %c0_28, %c0_29] : memref<5x48x96xf32, #tpu.memory_space<vmem>>, vector<1x48x96xf32>
    %22 = vector.shape_cast %21 : vector<1x48x96xf32> to vector<48x96xf32>
    %cst_30 = arith.constant dense<0.000000e+00> : vector<16x96xf32>
    %23 = tpu.matmul %20, %22, %cst_30 {dimension_numbers = #tpu.dot_dimension_numbers<[1], [0], [0], [1], [0, 0, 1, 1], [], []>} : vector<16x48xf32>, vector<48x96xf32>, vector<16x96xf32> -> vector<16x96xf32>
    %24 = arith.addf %18, %23 : vector<16x96xf32>
    %c0_31 = arith.constant 0 : index
    %c3 = arith.constant 3 : index
    %c0_32 = arith.constant 0 : index
    %25 = vector.load %arg13[%c0_31, %c3, %c0_32] : memref<1x20x48xf32, #tpu.memory_space<vmem>>, vector<1x16x48xf32>
    %26 = vector.shape_cast %25 : vector<1x16x48xf32> to vector<16x48xf32>
    %c3_33 = arith.constant 3 : index
    %c0_34 = arith.constant 0 : index
    %c0_35 = arith.constant 0 : index
    %27 = vector.load %arg2[%c3_33, %c0_34, %c0_35] : memref<5x48x96xf32, #tpu.memory_space<vmem>>, vector<1x48x96xf32>
    %28 = vector.shape_cast %27 : vector<1x48x96xf32> to vector<48x96xf32>
    %cst_36 = arith.constant dense<0.000000e+00> : vector<16x96xf32>
    %29 = tpu.matmul %26, %28, %cst_36 {dimension_numbers = #tpu.dot_dimension_numbers<[1], [0], [0], [1], [0, 0, 1, 1], [], []>} : vector<16x48xf32>, vector<48x96xf32>, vector<16x96xf32> -> vector<16x96xf32>
    %30 = arith.addf %24, %29 : vector<16x96xf32>
    %c0_37 = arith.constant 0 : index
    %c4 = arith.constant 4 : index
    %c0_38 = arith.constant 0 : index
    %31 = vector.load %arg13[%c0_37, %c4, %c0_38] : memref<1x20x48xf32, #tpu.memory_space<vmem>>, vector<1x16x48xf32>
    %32 = vector.shape_cast %31 : vector<1x16x48xf32> to vector<16x48xf32>
    %c4_39 = arith.constant 4 : index
    %c0_40 = arith.constant 0 : index
    %c0_41 = arith.constant 0 : index
    %33 = vector.load %arg2[%c4_39, %c0_40, %c0_41] : memref<5x48x96xf32, #tpu.memory_space<vmem>>, vector<1x48x96xf32>
    %34 = vector.shape_cast %33 : vector<1x48x96xf32> to vector<48x96xf32>
    %cst_42 = arith.constant dense<0.000000e+00> : vector<16x96xf32>
    %35 = tpu.matmul %32, %34, %cst_42 {dimension_numbers = #tpu.dot_dimension_numbers<[1], [0], [0], [1], [0, 0, 1, 1], [], []>} : vector<16x48xf32>, vector<48x96xf32>, vector<16x96xf32> -> vector<16x96xf32>
    %36 = arith.addf %30, %35 : vector<16x96xf32>
    %c0_43 = arith.constant 0 : index
    %c0_44 = arith.constant 0 : index
    %37 = vector.load %arg3[%c0_43, %c0_44] : memref<1x96xf32, #tpu.memory_space<vmem>>, vector<1x96xf32>
    %38 = vector.broadcast %37 : vector<1x96xf32> to vector<16x96xf32>
    %39 = arith.mulf %36, %38 : vector<16x96xf32>
    %c0_45 = arith.constant 0 : index
    %c0_46 = arith.constant 0 : index
    %40 = vector.load %arg4[%c0_45, %c0_46] : memref<1x96xf32, #tpu.memory_space<vmem>>, vector<1x96xf32>
    %41 = vector.broadcast %40 : vector<1x96xf32> to vector<16x96xf32>
    %42 = arith.addf %39, %41 : vector<16x96xf32>
    %cst_47 = arith.constant 0.000000e+00 : f32
    %43 = vector.broadcast %cst_47 : f32 to vector<16x96xf32>
    %44 = arith.maximumf %42, %43 : vector<16x96xf32>
    %45 = vector.shape_cast %44 : vector<16x96xf32> to vector<8x2x96xf32>
    %cst_48 = arith.constant dense<0xFF800000> : vector<8x96xf32>
    %46 = vector.multi_reduction <maximumf>, %45, %cst_48 [1] : vector<8x2x96xf32> to vector<8x96xf32>
    %c0_49 = arith.constant 0 : index
    %c0_50 = arith.constant 0 : index
    %c0_51 = arith.constant 0 : index
    %47 = vector.load %arg5[%c0_49, %c0_50, %c0_51] : memref<2x96x48xf32, #tpu.memory_space<vmem>>, vector<1x96x48xf32>
    %48 = vector.shape_cast %47 : vector<1x96x48xf32> to vector<96x48xf32>
    %cst_52 = arith.constant dense<0.000000e+00> : vector<8x48xf32>
    %49 = tpu.matmul %46, %48, %cst_52 {dimension_numbers = #tpu.dot_dimension_numbers<[1], [0], [0], [1], [0, 0, 1, 1], [], []>} : vector<8x96xf32>, vector<96x48xf32>, vector<8x48xf32> -> vector<8x48xf32>
    %c1_53 = arith.constant 1 : index
    %c0_54 = arith.constant 0 : index
    %c0_55 = arith.constant 0 : index
    %50 = vector.load %arg5[%c1_53, %c0_54, %c0_55] : memref<2x96x48xf32, #tpu.memory_space<vmem>>, vector<1x96x48xf32>
    %51 = vector.shape_cast %50 : vector<1x96x48xf32> to vector<96x48xf32>
    %cst_56 = arith.constant dense<0.000000e+00> : vector<8x48xf32>
    %52 = tpu.matmul %46, %51, %cst_56 {dimension_numbers = #tpu.dot_dimension_numbers<[1], [0], [0], [1], [0, 0, 1, 1], [], []>} : vector<8x96xf32>, vector<96x48xf32>, vector<8x48xf32> -> vector<8x48xf32>
    %53 = arith.maximumf %49, %52 : vector<8x48xf32>
    %54 = vector.shape_cast %53 : vector<8x48xf32> to vector<1x8x48xf32>
    %cst_57 = arith.constant 0.000000e+00 : f32
    %55 = vector.broadcast %cst_57 : f32 to vector<4x64xf32>
    %56 = vector.extract_strided_slice %54 {offsets = [0, 0, 0], sizes = [1, 4, 48], strides = [1, 1, 1]} : vector<1x8x48xf32> to vector<1x4x48xf32>
    %57 = vector.shape_cast %56 : vector<1x4x48xf32> to vector<4x48xf32>
    %c0_58 = arith.constant 0 : index
    %c0_59 = arith.constant 0 : index
    %c0_60 = arith.constant 0 : index
    %58 = vector.load %arg6[%c0_58, %c0_59, %c0_60] : memref<5x48x64xf32, #tpu.memory_space<vmem>>, vector<1x48x64xf32>
    %59 = vector.shape_cast %58 : vector<1x48x64xf32> to vector<48x64xf32>
    %cst_61 = arith.constant dense<0.000000e+00> : vector<4x64xf32>
    %60 = tpu.matmul %57, %59, %cst_61 {dimension_numbers = #tpu.dot_dimension_numbers<[1], [0], [0], [1], [0, 0, 1, 1], [], []>} : vector<4x48xf32>, vector<48x64xf32>, vector<4x64xf32> -> vector<4x64xf32>
    %61 = arith.addf %55, %60 : vector<4x64xf32>
    %62 = vector.extract_strided_slice %54 {offsets = [0, 1, 0], sizes = [1, 4, 48], strides = [1, 1, 1]} : vector<1x8x48xf32> to vector<1x4x48xf32>
    %63 = vector.shape_cast %62 : vector<1x4x48xf32> to vector<4x48xf32>
    %c1_62 = arith.constant 1 : index
    %c0_63 = arith.constant 0 : index
    %c0_64 = arith.constant 0 : index
    %64 = vector.load %arg6[%c1_62, %c0_63, %c0_64] : memref<5x48x64xf32, #tpu.memory_space<vmem>>, vector<1x48x64xf32>
    %65 = vector.shape_cast %64 : vector<1x48x64xf32> to vector<48x64xf32>
    %cst_65 = arith.constant dense<0.000000e+00> : vector<4x64xf32>
    %66 = tpu.matmul %63, %65, %cst_65 {dimension_numbers = #tpu.dot_dimension_numbers<[1], [0], [0], [1], [0, 0, 1, 1], [], []>} : vector<4x48xf32>, vector<48x64xf32>, vector<4x64xf32> -> vector<4x64xf32>
    %67 = arith.addf %61, %66 : vector<4x64xf32>
    %68 = vector.extract_strided_slice %54 {offsets = [0, 2, 0], sizes = [1, 4, 48], strides = [1, 1, 1]} : vector<1x8x48xf32> to vector<1x4x48xf32>
    %69 = vector.shape_cast %68 : vector<1x4x48xf32> to vector<4x48xf32>
    %c2_66 = arith.constant 2 : index
    %c0_67 = arith.constant 0 : index
    %c0_68 = arith.constant 0 : index
    %70 = vector.load %arg6[%c2_66, %c0_67, %c0_68] : memref<5x48x64xf32, #tpu.memory_space<vmem>>, vector<1x48x64xf32>
    %71 = vector.shape_cast %70 : vector<1x48x64xf32> to vector<48x64xf32>
    %cst_69 = arith.constant dense<0.000000e+00> : vector<4x64xf32>
    %72 = tpu.matmul %69, %71, %cst_69 {dimension_numbers = #tpu.dot_dimension_numbers<[1], [0], [0], [1], [0, 0, 1, 1], [], []>} : vector<4x48xf32>, vector<48x64xf32>, vector<4x64xf32> -> vector<4x64xf32>
    %73 = arith.addf %67, %72 : vector<4x64xf32>
    %74 = vector.extract_strided_slice %54 {offsets = [0, 3, 0], sizes = [1, 4, 48], strides = [1, 1, 1]} : vector<1x8x48xf32> to vector<1x4x48xf32>
    %75 = vector.shape_cast %74 : vector<1x4x48xf32> to vector<4x48xf32>
    %c3_70 = arith.constant 3 : index
    %c0_71 = arith.constant 0 : index
    %c0_72 = arith.constant 0 : index
    %76 = vector.load %arg6[%c3_70, %c0_71, %c0_72] : memref<5x48x64xf32, #tpu.memory_space<vmem>>, vector<1x48x64xf32>
    %77 = vector.shape_cast %76 : vector<1x48x64xf32> to vector<48x64xf32>
    %cst_73 = arith.constant dense<0.000000e+00> : vector<4x64xf32>
    %78 = tpu.matmul %75, %77, %cst_73 {dimension_numbers = #tpu.dot_dimension_numbers<[1], [0], [0], [1], [0, 0, 1, 1], [], []>} : vector<4x48xf32>, vector<48x64xf32>, vector<4x64xf32> -> vector<4x64xf32>
    %79 = arith.addf %73, %78 : vector<4x64xf32>
    %80 = vector.extract_strided_slice %54 {offsets = [0, 4, 0], sizes = [1, 4, 48], strides = [1, 1, 1]} : vector<1x8x48xf32> to vector<1x4x48xf32>
    %81 = vector.shape_cast %80 : vector<1x4x48xf32> to vector<4x48xf32>
    %c4_74 = arith.constant 4 : index
    %c0_75 = arith.constant 0 : index
    %c0_76 = arith.constant 0 : index
    %82 = vector.load %arg6[%c4_74, %c0_75, %c0_76] : memref<5x48x64xf32, #tpu.memory_space<vmem>>, vector<1x48x64xf32>
    %83 = vector.shape_cast %82 : vector<1x48x64xf32> to vector<48x64xf32>
    %cst_77 = arith.constant dense<0.000000e+00> : vector<4x64xf32>
    %84 = tpu.matmul %81, %83, %cst_77 {dimension_numbers = #tpu.dot_dimension_numbers<[1], [0], [0], [1], [0, 0, 1, 1], [], []>} : vector<4x48xf32>, vector<48x64xf32>, vector<4x64xf32> -> vector<4x64xf32>
    %85 = arith.addf %79, %84 : vector<4x64xf32>
    %c0_78 = arith.constant 0 : index
    %c0_79 = arith.constant 0 : index
    %86 = vector.load %arg7[%c0_78, %c0_79] : memref<1x64xf32, #tpu.memory_space<vmem>>, vector<1x64xf32>
    %87 = vector.broadcast %86 : vector<1x64xf32> to vector<4x64xf32>
    %88 = arith.mulf %85, %87 : vector<4x64xf32>
    %c0_80 = arith.constant 0 : index
    %c0_81 = arith.constant 0 : index
    %89 = vector.load %arg8[%c0_80, %c0_81] : memref<1x64xf32, #tpu.memory_space<vmem>>, vector<1x64xf32>
    %90 = vector.broadcast %89 : vector<1x64xf32> to vector<4x64xf32>
    %91 = arith.addf %88, %90 : vector<4x64xf32>
    %cst_82 = arith.constant 0.000000e+00 : f32
    %92 = vector.broadcast %cst_82 : f32 to vector<4x64xf32>
    %93 = arith.maximumf %91, %92 : vector<4x64xf32>
    %94 = vector.shape_cast %93 : vector<4x64xf32> to vector<2x2x64xf32>
    %cst_83 = arith.constant dense<0xFF800000> : vector<2x64xf32>
    %95 = vector.multi_reduction <maximumf>, %94, %cst_83 [1] : vector<2x2x64xf32> to vector<2x64xf32>
    %c0_84 = arith.constant 0 : index
    %c0_85 = arith.constant 0 : index
    %c0_86 = arith.constant 0 : index
    %96 = vector.load %arg9[%c0_84, %c0_85, %c0_86] : memref<2x64x32xf32, #tpu.memory_space<vmem>>, vector<1x64x32xf32>
    %97 = vector.shape_cast %96 : vector<1x64x32xf32> to vector<64x32xf32>
    %cst_87 = arith.constant dense<0.000000e+00> : vector<2x32xf32>
    %98 = tpu.matmul %95, %97, %cst_87 {dimension_numbers = #tpu.dot_dimension_numbers<[1], [0], [0], [1], [0, 0, 1, 1], [], []>} : vector<2x64xf32>, vector<64x32xf32>, vector<2x32xf32> -> vector<2x32xf32>
    %c1_88 = arith.constant 1 : index
    %c0_89 = arith.constant 0 : index
    %c0_90 = arith.constant 0 : index
    %99 = vector.load %arg9[%c1_88, %c0_89, %c0_90] : memref<2x64x32xf32, #tpu.memory_space<vmem>>, vector<1x64x32xf32>
    %100 = vector.shape_cast %99 : vector<1x64x32xf32> to vector<64x32xf32>
    %cst_91 = arith.constant dense<0.000000e+00> : vector<2x32xf32>
    %101 = tpu.matmul %95, %100, %cst_91 {dimension_numbers = #tpu.dot_dimension_numbers<[1], [0], [0], [1], [0, 0, 1, 1], [], []>} : vector<2x64xf32>, vector<64x32xf32>, vector<2x32xf32> -> vector<2x32xf32>
    %102 = arith.maximumf %98, %101 : vector<2x32xf32>
    %103 = vector.shape_cast %102 : vector<2x32xf32> to vector<1x2x32xf32>
    %cst_92 = arith.constant dense<0.000000e+00> : vector<1x32xf32>
    %104 = vector.multi_reduction <add>, %103, %cst_92 [1] : vector<1x2x32xf32> to vector<1x32xf32>
    %c0_93 = arith.constant 0 : index
    %c0_94 = arith.constant 0 : index
    %105 = vector.load %arg10[%c0_93, %c0_94] : memref<32x64xf32, #tpu.memory_space<vmem>>, vector<32x64xf32>
    %cst_95 = arith.constant dense<0.000000e+00> : vector<1x64xf32>
    %106 = tpu.matmul %104, %105, %cst_95 {dimension_numbers = #tpu.dot_dimension_numbers<[1], [0], [0], [1], [0, 0, 1, 1], [], []>} : vector<1x32xf32>, vector<32x64xf32>, vector<1x64xf32> -> vector<1x64xf32>
    %c0_96 = arith.constant 0 : index
    %c0_97 = arith.constant 0 : index
    %107 = vector.load %arg11[%c0_96, %c0_97] : memref<1x64xf32, #tpu.memory_space<vmem>>, vector<1x64xf32>
    %108 = arith.addf %106, %107 : vector<1x64xf32>
    %109 = vector.shape_cast %108 : vector<1x64xf32> to vector<1x1x64xf32>
    %c0_98 = arith.constant 0 : index
    %c0_99 = arith.constant 0 : index
    %c0_100 = arith.constant 0 : index
    %110 = vector.load %arg12[%c0_98, %c0_99, %c0_100] : memref<1x1x64xf32, #tpu.memory_space<vmem>>, vector<1x1x64xf32>
    tpu.vector_store %arg12[%c0_98, %c0_99, %c0_100], %109 {strides = array<i32>} : memref<1x1x64xf32, #tpu.memory_space<vmem>>, vector<1x1x64xf32>,
    return
  }
  func.func @transform_0(%arg0: i32) -> (i32, i32, i32) {
    %c0_i32 = arith.constant 0 : i32
    %c0_i32_0 = arith.constant 0 : i32
    %c0_i32_1 = arith.constant 0 : i32
    return %arg0, %c0_i32, %c0_i32_0 : i32, i32, i32
  }
  func.func @transform_1(%arg0: i32) -> (i32, i32, i32) {
    %c0_i32 = arith.constant 0 : i32
    %c0_i32_0 = arith.constant 0 : i32
    %c0_i32_1 = arith.constant 0 : i32
    %c0_i32_2 = arith.constant 0 : i32
    return %c0_i32, %c0_i32_0, %c0_i32_1 : i32, i32, i32
  }
  func.func @transform_2(%arg0: i32) -> (i32, i32) {
    %c0_i32 = arith.constant 0 : i32
    %c0_i32_0 = arith.constant 0 : i32
    %c0_i32_1 = arith.constant 0 : i32
    return %c0_i32, %c0_i32_0 : i32, i32
  }
  func.func @transform_3(%arg0: i32) -> (i32, i32) {
    %c0_i32 = arith.constant 0 : i32
    %c0_i32_0 = arith.constant 0 : i32
    %c0_i32_1 = arith.constant 0 : i32
    return %c0_i32, %c0_i32_0 : i32, i32
  }
  func.func @transform_4(%arg0: i32) -> (i32, i32, i32) {
    %c0_i32 = arith.constant 0 : i32
    %c0_i32_0 = arith.constant 0 : i32
    %c0_i32_1 = arith.constant 0 : i32
    %c0_i32_2 = arith.constant 0 : i32
    return %c0_i32, %c0_i32_0, %c0_i32_1 : i32, i32, i32
  }
  func.func @transform_5(%arg0: i32) -> (i32, i32, i32) {
    %c0_i32 = arith.constant 0 : i32
    %c0_i32_0 = arith.constant 0 : i32
    %c0_i32_1 = arith.constant 0 : i32
    %c0_i32_2 = arith.constant 0 : i32
    return %c0_i32, %c0_i32_0, %c0_i32_1 : i32, i32, i32
  }
  func.func @transform_6(%arg0: i32) -> (i32, i32) {
    %c0_i32 = arith.constant 0 : i32
    %c0_i32_0 = arith.constant 0 : i32
    %c0_i32_1 = arith.constant 0 : i32
    return %c0_i32, %c0_i32_0 : i32, i32
  }
  func.func @transform_7(%arg0: i32) -> (i32, i32) {
    %c0_i32 = arith.constant 0 : i32
    %c0_i32_0 = arith.constant 0 : i32
    %c0_i32_1 = arith.constant 0 : i32
    return %c0_i32, %c0_i32_0 : i32, i32
  }
  func.func @transform_8(%arg0: i32) -> (i32, i32, i32) {
    %c0_i32 = arith.constant 0 : i32
    %c0_i32_0 = arith.constant 0 : i32
    %c0_i32_1 = arith.constant 0 : i32
    %c0_i32_2 = arith.constant 0 : i32
    return %c0_i32, %c0_i32_0, %c0_i32_1 : i32, i32, i32
  }
  func.func @transform_9(%arg0: i32) -> (i32, i32) {
    %c0_i32 = arith.constant 0 : i32
    %c0_i32_0 = arith.constant 0 : i32
    %c0_i32_1 = arith.constant 0 : i32
    return %c0_i32, %c0_i32_0 : i32, i32
  }
  func.func @transform_10(%arg0: i32) -> (i32, i32) {
    %c0_i32 = arith.constant 0 : i32
    %c0_i32_0 = arith.constant 0 : i32
    %c0_i32_1 = arith.constant 0 : i32
    return %c0_i32, %c0_i32_0 : i32, i32
  }
  func.func @transform_11(%arg0: i32) -> (i32, i32, i32) {
    %c0_i32 = arith.constant 0 : i32
    %c0_i32_0 = arith.constant 0 : i32
    %c0_i32_1 = arith.constant 0 : i32
    return %arg0, %c0_i32, %c0_i32_0 : i32, i32, i32
  }
}

</mosaic_0001>

<bundles_post_ra>
// kernel: lenet_backbone_forward.1
= control target key start
LH: loop header
LB: loop body
LE: loop exit
PB: predicated region body
PF: predicated region fallthrough
CT: control target
= control target key end

     0   :  { %16 = vsyncpa [#allocation4], 0  ;;  %s3294_s0 = inlined_call_operand.vmem [shape: f32[2,16,48], index: 0, kind: input, shape index: {}]   ;;  %s3295_s1 = inlined_call_operand.vmem [shape: f32[5,48,96], index: 1, kind: input, shape index: {}]   ;;  %s3296_s2 = inlined_call_operand.vmem [shape: f32[1,96], index: 2, kind: input, shape index: {}]   ;;  %s3297_s3 = inlined_call_operand.vmem [shape: f32[1,96], index: 3, kind: input, shape index: {}]   ;;  %s3298_s4 = inlined_call_operand.vmem [shape: f32[2,96,48], index: 4, kind: input, shape index: {}]   ;;  %s3299_s5 = inlined_call_operand.vmem [shape: f32[5,48,64], index: 5, kind: input, shape index: {}]   ;;  %s3300_s6 = inlined_call_operand.vmem [shape: f32[1,64], index: 6, kind: input, shape index: {}]   ;;  %s3301_s7 = inlined_call_operand.vmem [shape: f32[1,64], index: 7, kind: input, shape index: {}]   ;;  %s3302_s8 = inlined_call_operand.vmem [shape: f32[2,64,32], index: 8, kind: input, shape index: {}]   ;;  %s3303_s9 = inlined_call_operand.vmem [shape: f32[32,64], index: 9, kind: input, shape index: {}]   ;;  %s3304_s10 = inlined_call_operand.vmem [shape: f32[1,64], index: 10, kind: input, shape index: {}]   ;;  %s3305_s11 = inlined_call_operand.hbm [shape: f32[2,1,64], index: 11, kind: output, shape index: {}]  }
   0x1   :  { %18 = vsyncpa [#allocation4 + $0x1], 0  ;;  %s2763_s17 = smov 0   ;;  %s2765_s18 = smov 0  }
   0x2   :  { %s2767_s19 = smov 0   ;;  %s2769_s20 = smov 0  }
   0x3 LB: > { %s2784_s21 = sadd.s32 4294967295, %s2696_s20   ;;  %s1925_s22 = sadd.s32 4294967294, %s2696_s20   ;;  %s2696_s20 = sphi %s2769_s20, %s3313_s20   ;;  %s2692_s19 = sphi %s2767_s19, %s3312_s19   ;;  %s2688_s18 = sphi %s2765_s18, %s3311_s18   ;;  %s2684_s17 = sphi %s2763_s17, %s3310_s17  }
   0x4   : > { %s2788_s23 = sadd.s32 1, %s2696_s20   ;;  %s267_s24 = sadd.s32 1, %s2692_s19 }
   0x5   : > { %s264_s25 = ssub.s32 %s2696_s20, %s2788_s23  ;;  %p277_p0 = scmp.ne.s32.totalorder %s2692_s19, %s2688_s18 }
   0x6   : > { %p265_p1 = scmp.eq.s32.totalorder %s264_s25, 0  ;;  %p278_p2 = scmp.eq.s32.totalorder %s2784_s21, 1 }
   0x7   : > { %p283_p3 = scmp.ne.s32.totalorder %s2688_s18, %s2684_s17  ;;  %p284_p4 = scmp.eq.s32.totalorder %s1925_s22, 1 }
   0x8   : > { %s2799_s26 = scalar_select %p265_p1, %s2692_s19, %s267_s24  }
   0x9   : > { %p2801_p5 = por %p278_p2, %p277_p0  ;;  %p2805_p6 = por %p284_p4, %p283_p3 }
   0xa   : > { %3306 = sst [smem:[#allocation6_spill]] %s2799_s26  ;;  %p1928_p7 = scmp.ge.s32.totalorder %s2696_s20, 1 }
   0xb   : > { %p340_p8 = scmp.lt.s32.totalorder %s2696_s20, 3 }
   0xd   : > { %p341_p9 = pnand %p1928_p7, %p340_p8 }
   0xe   : > { %v1931_v0 = vld [vmem:[%s3295_s1 + $0x30] sm:$0xff] (!%p341_p9)  ;;  %v1932_v1 = vld [vmem:[%s3295_s1 + $0x38] sm:$0xff] (!%p341_p9)  ;;  %v1933_v2 = vld [vmem:[%s3295_s1 + $0x40] sm:$0xff] (!%p341_p9)  ;;  %p379_p10 = scmp.lt.s32.totalorder (!%p341_p9), %s2784_s21, 1  ;;  %vm384_vm0 = vcmask (!%p341_p9), 386048   ;;  %v2698_v5 = vmov (!%p341_p9), 0.0  }
   0xf   : > { %344 = sbr.rel (%p341_p9) target bundleno = 1323 (0x52b), region = 64  ;;  %v2404_v3 = vpack.c.bf16 (!%p341_p9), %v1932_v1, %v1931_v0  ;;  %v1934_v4 = vld [vmem:[%s3295_s1 + $0x48] sm:$0xff] (!%p341_p9)  ;;  %385 = vst.msk [vmem:[#allocation2] sm:$0x3] (!%p341_p9), %vm384_vm0, %v2698_v5  ;;  %386 = vst.msk [vmem:[#allocation2 + $0x12] sm:$0x3] (!%p341_p9), %vm384_vm0, %v2698_v5 }
  0x10   : > { %v2408_v6 = vpack.c.bf16 (!%p341_p9), %v1934_v4, %v1933_v2  ;;  %v1935_v7 = vld [vmem:[%s3295_s1 + $0x50] sm:$0xff] (!%p341_p9)  ;;  %v1936_v8 = vld [vmem:[%s3295_s1 + $0x58] sm:$0xff] (!%p341_p9)  ;;  %vm389_vm1 = vcmask (!%p341_p9), 392192   ;;  %v394_v10 = vld [vmem:[%s3295_s1] sm:$0xff] (!%p341_p9)  ;;  %v2699_v61 = vmov (!%p341_p9), 0.0|0.0   ;;  %vm2700_vm2 = vmmov (!%p341_p9), 0  }
  0x11   : > { %2405 = vmatprep.subr.bf16.mxu0 (!%p341_p9), %v2404_v3  ;;  %v2412_v9 = vpack.c.bf16 (!%p341_p9), %v1936_v8, %v1935_v7  ;;  %v395_v13 = vld [vmem:[%s3295_s1 + $0x8] sm:$0xff] (!%p341_p9)  ;;  %v396_v15 = vld [vmem:[%s3295_s1 + $0x10] sm:$0xff] (!%p341_p9)  ;;  %v397_v16 = vld [vmem:[%s3295_s1 + $0x18] sm:$0xff] (!%p341_p9)  ;;  %2464 = vmatprep.subr.bf16.mxu1 (!%p341_p9), %v2699_v61  ;;  %vm911_vm3 = vcmask (!%p341_p9), 779264   ;;  %vm988_vm4 = vcmask (!%p341_p9), 1041409   ;;  %vm990_vm5 = vcmask (!%p341_p9), 1042434  }
  0x12   : > { %2407 = vmatpush3.bf16.msra.mxu0 (!%p341_p9), %v2404_v3  ;;  %v2416_v14 = vpack.c.bf16 (!%p341_p9), %v395_v13, %v394_v10  ;;  %v2420_v19 = vpack.c.bf16 (!%p341_p9), %v397_v16, %v396_v15  ;;  %v398_v21 = vld [vmem:[%s3295_s1 + $0x20] sm:$0xff] (!%p341_p9)  ;;  %v399_v22 = vld [vmem:[%s3295_s1 + $0x28] sm:$0xff] (!%p341_p9)  ;;  %v1943_v27 = vld [vmem:[%s3295_s1 + $0x70] sm:$0xff] (!%p341_p9)  ;;  %2250 = vmatprep.mubr.msk.f32.mxu1 (!%p341_p9), %vm2700_vm2, %v2698_v5  ;;  %v873_v16 = vlaneseq (!%p341_p9)  ;;  %vm992_vm6 = vcmask (!%p341_p9), 1043459   ;;  %s2023_s14 = sshll.u32 (!%p341_p9), %s2784_s21, 4 }
  0x13   : > { %2409 = vmatprep.subr.bf16.mxu0 (!%p341_p9), %v2408_v6  ;;  %v2424_v23 = vpack.c.bf16 (!%p341_p9), %v399_v22, %v398_v21  ;;  %v1941_v24 = vld [vmem:[%s3295_s1 + $0x60] sm:$0xff] (!%p341_p9)  ;;  %v1942_v25 = vld [vmem:[%s3295_s1 + $0x68] sm:$0xff] (!%p341_p9)  ;;  %v1944_v28 = vld [vmem:[%s3295_s1 + $0x78] sm:$0xff] (!%p341_p9)  ;;  %vm994_vm7 = vcmask (!%p341_p9), 1044484   ;;  %vm996_vm8 = vcmask (!%p341_p9), 1045509   ;;  %vm998_vm9 = vcmask (!%p341_p9), 1046534   ;;  %s3252_s25 = scalar_lea.hbm (!%p341_p9), %s3305_s11, %s2023_s14 }
  0x14   : > { %v2428_v26 = vpack.c.bf16 (!%p341_p9), %v1942_v25, %v1941_v24  ;;  %v2432_v30 = vpack.c.bf16 (!%p341_p9), %v1944_v28, %v1943_v27  ;;  %v1945_v32 = vld [vmem:[%s3295_s1 + $0x80] sm:$0xff] (!%p341_p9)  ;;  %v1946_v33 = vld [vmem:[%s3295_s1 + $0x88] sm:$0xff] (!%p341_p9)  ;;  %v1949_v35 = vld [vmem:[%s3295_s1 + $0x90] sm:$0xff] (!%p341_p9)  ;;  %vm1000_vm10 = vcmask (!%p341_p9), 1047559   ;;  %vm1002_vm11 = vcmask (!%p341_p9), 785408  }
  0x15   : > { %v2436_v34 = vpack.c.bf16 (!%p341_p9), %v1946_v33, %v1945_v32  ;;  %v1950_v36 = vld [vmem:[%s3295_s1 + $0x98] sm:$0xff] (!%p341_p9)  ;;  %v1951_v38 = vld [vmem:[%s3295_s1 + $0xa0] sm:$0xff] (!%p341_p9)  ;;  %v1952_v39 = vld [vmem:[%s3295_s1 + $0xa8] sm:$0xff] (!%p341_p9)  ;;  %vm1589_vm12 = vcmask (!%p341_p9), 517120   ;;  %vm1615_vm13 = vcmask (!%p341_p9), 523264   ;;  %vm1768_vm14 = vcmask (!%p341_p9), 254976  }
  0x16   : > { %s380_s12 = scalar_select %p379_p10, %s2784_s21, 1  ;;  %2411 = vmatpush3.bf16.msra.mxu0 %v2408_v6  ;;  %v2440_v37 = vpack.c.bf16 %v1950_v36, %v1949_v35  ;;  %v2444_v41 = vpack.c.bf16 %v1952_v39, %v1951_v38  ;;  %v1953_v43 = vld [vmem:[%s3295_s1 + $0xb0] sm:$0xff]  ;;  %v1954_v44 = vld [vmem:[%s3295_s1 + $0xb8] sm:$0xff]  ;;  %v1957_v46 = vld [vmem:[%s3295_s1 + $0xc0] sm:$0xff]  ;;  %vm1781_vm15 = vcmask 261120   ;;  %vm1855_vm0 = vcmask 516096  }
  0x17   : > { %2413 = vmatprep.subr.bf16.mxu0 %v2412_v9  ;;  %v2448_v45 = vpack.c.bf16 %v1954_v44, %v1953_v43  ;;  %v1958_v47 = vld [vmem:[%s3295_s1 + $0xc8] sm:$0xff]  ;;  %v1959_v49 = vld [vmem:[%s3295_s1 + $0xd0] sm:$0xff]  ;;  %v1960_v50 = vld [vmem:[%s3295_s1 + $0xd8] sm:$0xff]  ;;  %s2702_s21 = smov [#allocation3]  }
  0x18   : > { %s2026_s13 = sshll.u32 %s380_s12, 4  ;;  %v2452_v48 = vpack.c.bf16 %v1958_v47, %v1957_v46  ;;  %v2456_v52 = vpack.c.bf16 %v1960_v50, %v1959_v49  ;;  %v1961_v54 = vld [vmem:[%s3295_s1 + $0xe0] sm:$0xff]  ;;  %v1962_v55 = vld [vmem:[%s3295_s1 + $0xe8] sm:$0xff]  ;;  %v970_v62 = vld [vmem:[%s3298_s4 + $0x10] sm:$0xff]  ;;  %s377_s12 = sand.u32 1, %s2688_s18  }
  0x19   : > { %s383_s16 = scalar_lea.vmem %s3294_s0, %s2026_s13  ;;  %v2460_v56 = vpack.c.bf16 %v1962_v55, %v1961_v54  ;;  %v968_v58 = vld [vmem:[%s3298_s4] sm:$0xff]  ;;  %v969_v59 = vld [vmem:[%s3298_s4 + $0x8] sm:$0xff]  ;;  %v971_v63 = vld [vmem:[%s3298_s4 + $0x18] sm:$0xff]  ;;  %s378_s15 = scalar_lea.vmem [#allocation3], %s377_s12 }
  0x1a   : > { %v387_v11 = vld [vmem:[%s383_s16] sm:$0xff]  ;;  %v388_v12 = vld [vmem:[%s383_s16 + $0x8] sm:$0xff]  ;;  %2415 = vmatpush3.bf16.msra.mxu0 %v2412_v9  ;;  %v2465_v60 = vpack.c.bf16 %v969_v59, %v968_v58  ;;  %v2468_v0 = vpack.c.bf16 %v971_v63, %v970_v62  ;;  %v974_v4 = vld [vmem:[%s3298_s4 + $0x30] sm:$0xff]  ;;  %s1870_s16 = sshll.u32 %s378_s15, 4  ;;  %s1858_s29 = scalar_lea.sflag [#allocation4], %s377_s12  ;;  %s3254_s16 = int_to_ptr.vmem [resolvable:$true] %s1870_s16 }
  0x1b   : > { %390 = vst.msk [vmem:[#allocation2 + $0x2] sm:$0xff] %vm389_vm1, %v387_v11  ;;  %391 = vst.msk [vmem:[#allocation2 + $0xa] sm:$0xff] %vm389_vm1, %v388_v12  ;;  %2417 = vmatprep.subr.bf16.mxu0 %v2416_v14  ;;  %v972_v1 = vld [vmem:[%s3298_s4 + $0x20] sm:$0xff]  ;;  %v973_v2 = vld [vmem:[%s3298_s4 + $0x28] sm:$0xff]  ;;  %s2634_s30 = scalar_lea.vmem %s3254_s16, 16  ;;  %s2638_s26 = sshll.u32 %s2702_s21, 4  ;;  %s2639_s26 = int_to_ptr.vmem [resolvable:$false] %s2638_s26 }
  0x1c   : > { %2466 = vmatpush3.bf16.msra.mxu1 %v2465_v60  ;;  %v2471_v3 = vpack.c.bf16 %v973_v2, %v972_v1  ;;  %v975_v6 = vld [vmem:[%s3298_s4 + $0x38] sm:$0xff]  ;;  %v976_v8 = vld [vmem:[%s3298_s4 + $0x40] sm:$0xff]  ;;  %v977_v9 = vld [vmem:[%s3298_s4 + $0x48] sm:$0xff]  ;;  %p2635_p11 = scmp.ne.s32.totalorder %s3254_s16, %s2634_s30  ;;  %s2640_s13 = scalar_lea.vmem %s2639_s26, 32 }
  0x1d   : > { %2467 = vmatprep.subr.bf16.mxu1 %v2699_v61  ;;  %v2474_v7 = vpack.c.bf16 %v975_v6, %v974_v4  ;;  %v2477_v10 = vpack.c.bf16 %v977_v9, %v976_v8  ;;  %v978_v11 = vld [vmem:[%s3298_s4 + $0x50] sm:$0xff]  ;;  %v979_v12 = vld [vmem:[%s3298_s4 + $0x58] sm:$0xff]  ;;  %v1966_v21 = vld [vmem:[%s3297_s3] ss:$0 sm:$0xff]  ;;  %p2641_p0 = scmp.lt.s32.totalorder %s3254_s16, %s2639_s26  ;;  %p2642_p1 = scmp.lt.s32.totalorder %s2640_s13, %s2634_s30 }
  0x1e   : > { %v2480_v13 = vpack.c.bf16 %v979_v12, %v978_v11  ;;  %p2636_p12 = pnand %p2635_p11, %p2801_p5 }
  0x1f   : > { %p2643_p2 = por %p2642_p1, %p2641_p0 }
  0x20   : > { %2469 = vmatpush3.bf16.msra.mxu1 %v2468_v0  ;;  %p2637_p13 = pneg %p2636_p12 }
  0x21   : > { %2470 = vmatprep.subr.bf16.mxu1 %v2699_v61 }
  0x22   : > { %v400_v17 = vld [vmem:[#allocation2 + $0x1] sm:$0xff]  ;;  %v401_v18 = vld [vmem:[#allocation2 + $0x9] sm:$0xff]  ;;  %p2644_p3 = pnand %p2643_p2, %p2637_p13 }
  0x23   : > { %v392_v20 = vld [vmem:[#allocation2] sm:$0xff]  ;;  %2163 = vmatprep.mubr.msk.f32.mxu0 %vm389_vm1, %v400_v17  ;;  %v393_v29 = vld [vmem:[#allocation2 + $0x8] sm:$0xff] }
  0x24   : > { %2164 = vmatmul.mubr.msk.f32.vlgmr.msra.gmra.mrb[0].mxu0 %vm389_vm1, %v401_v18  ;;  %v571_v31 = vld [vmem:[#allocation2 + $0x2] sm:$0xff]  ;;  %v572_v40 = vld [vmem:[#allocation2 + $0xa] sm:$0xff]  ;;  %2472 = vmatpush3.bf16.msra.mxu1 %v2471_v3  ;;  %v1965_v17 = vld [vmem:[%s3296_s2] ss:$0 sm:$0xff] }
  0x25   : > { %2419 = vmatpush3.bf16.msra.mxu0 %v2416_v14  ;;  %2178 = vmatprep.mubr.msk.f32.mxu0 %vm389_vm1, %v392_v20  ;;  %v663_v42 = vld [vmem:[#allocation2 + $0x3] sm:$0xff]  ;;  %v664_v51 = vld [vmem:[#allocation2 + $0xb] sm:$0xff]  ;;  %v2701_v14 = vmov 1983009808  }
  0x26   : > { %2421 = vmatprep.subr.bf16.mxu0 %v2420_v19  ;;  %v755_v53 = vld [vmem:[#allocation2 + $0x4] sm:$0xff]  ;;  %v756_v57 = vld [vmem:[#allocation2 + $0xc] sm:$0xff]  ;;  %2473 = vmatprep.subr.bf16.mxu1 %v2699_v61  ;;  %v871_v15 = vunpack.c.l.s4 %v2701_v14 }
  0x28   : > { %2475 = vmatpush3.bf16.msra.mxu1 %v2474_v7  ;;  %v872_v18 = vunpack.c.0.s8 %v871_v15 }
  0x29   : > { %2423 = vmatpush3.bf16.msra.mxu0 %v2420_v19  ;;  %2476 = vmatprep.subr.bf16.mxu1 %v2699_v61  ;;  %v874_v19 = vshrl.u32 %v873_v16, 7 }
  0x2a   : > { %2425 = vmatprep.subr.bf16.mxu0 %v2424_v23 }
  0x2c   : > { %2478 = vmatpush3.bf16.msra.mxu1 %v2477_v10 }
  0x2d   : > { %2427 = vmatpush3.bf16.msra.mxu0 %v2424_v23  ;;  %2479 = vmatprep.subr.bf16.mxu1 %v2699_v61 }
  0x2e   : > { %2429 = vmatprep.subr.bf16.mxu0 %v2428_v26 }
  0x30   : > { %2179 = vmatmul.mubr.msk.f32.vlgmr.msra.gmra.mrb[0].mxu0 %vm389_vm1, %v393_v29  ;;  %2481 = vmatpush3.bf16.msra.mxu1 %v2480_v13 }
  0x31   : > { %2431 = vmatpush3.bf16.msra.mxu0 %v2428_v26  ;;  %2193 = vmatprep.mubr.msk.f32.mxu0 %vm389_vm1, %v571_v31  ;;  %v2974_v26 = vsub.s32 %v872_v18, %v874_v19 }
  0x32   : > { %2433 = vmatprep.subr.bf16.mxu0 %v2432_v30  ;;  %2482 = vmatprep.subr.bf16.mxu1 %v2699_v61 }
  0x35   : > { %2435 = vmatpush3.bf16.msra.mxu0 %v2432_v30 }
  0x36   : > { %2437 = vmatprep.subr.bf16.mxu0 %v2436_v34 }
  0x39   : > { %2439 = vmatpush3.bf16.msra.mxu0 %v2436_v34 }
  0x3a   : > { %2441 = vmatprep.subr.bf16.mxu0 %v2440_v37 }
  0x3c   : > { %2194 = vmatmul.mubr.msk.f32.vlgmr.msra.gmra.mrb[0].mxu0 %vm389_vm1, %v572_v40 }
  0x3d   : > { %2443 = vmatpush3.bf16.msra.mxu0 %v2440_v37  ;;  %2208 = vmatprep.mubr.msk.f32.mxu0 %vm389_vm1, %v663_v42 }
  0x3e   : > { %2445 = vmatprep.subr.bf16.mxu0 %v2444_v41 }
  0x41   : > { %2447 = vmatpush3.bf16.msra.mxu0 %v2444_v41 }
  0x42   : > { %2449 = vmatprep.subr.bf16.mxu0 %v2448_v45 }
  0x45   : > { %2451 = vmatpush3.bf16.msra.mxu0 %v2448_v45 }
  0x46   : > { %2453 = vmatprep.subr.bf16.mxu0 %v2452_v48 }
  0x48   : > { %2209 = vmatmul.mubr.msk.f32.vlgmr.msra.gmra.mrb[0].mxu0 %vm389_vm1, %v664_v51 }
  0x49   : > { %2455 = vmatpush3.bf16.msra.mxu0 %v2452_v48  ;;  %2223 = vmatprep.mubr.msk.f32.mxu0 %vm389_vm1, %v755_v53 }
  0x4a   : > { %2457 = vmatprep.subr.bf16.mxu0 %v2456_v52 }
  0x4d   : > { %2459 = vmatpush3.bf16.msra.mxu0 %v2456_v52 }
  0x4e   : > { %2461 = vmatprep.subr.bf16.mxu0 %v2460_v56 }
  0x51   : > { %2463 = vmatpush3.bf16.msra.mxu0 %v2460_v56 }
  0x52   : > { %2545 = vmatprep.subr.bf16.mxu0 %v2699_v61 }
  0x54   : > { %2224 = vmatmul.mubr.msk.f32.vlgmr.msra.gmra.mrb[0].mxu0 %vm389_vm1, %v756_v57 }
  0x55   : > { %2371 = vmatprep.mubr.msk.f32.mxu0 %vm2700_vm2, %v2698_v5 }
 0x127   : > { %v2225_v20 = vpop.f32.mrb[0].mxu0 }
 0x128   : > { %v855_v22 = vmul.f32 %v2225_v20, %v1965_v17  ;;  %v836_v23 = vpop.f32.mrb[1].mxu0 }
 0x129   : > { %v854_v24 = vmul.f32 %v1965_v17, %v836_v23 }
 0x12a   : > { %v864_v25 = vadd.f32 %v1966_v21, %v855_v22 }
 0x12b   : > { %v863_v27 = vadd.f32 %v1966_v21, %v854_v24 }
 0x12c   : > { %v866_v28 = vmax.f32 %v864_v25, 0.0 }
 0x12d   : > { %v865_v29 = vmax.f32 %v863_v27, 0.0 }
 0x12e   : > { %v886_v30 = vcombine.high %v866_v28, %v866_v28  ;;  %v893_v31 = vrot.slane %v866_v28, %v2974_v26 }
 0x12f   : > { %v869_v32 = vcombine.high %v865_v29, %v865_v29  ;;  %v876_v33 = vrot.slane %v865_v29, %v2974_v26 }
 0x130   : > { %v900_v34 = vrot.slane %v886_v30, %v2974_v26  ;;  %v901_v35 = vcombine.high %v893_v31, %v893_v31  ;;  %v940_v36 = vsel %vm911_vm3, %v893_v31, -inf }
 0x131   : > { %v941_v37 = vrot.slane %v940_v36, 4  ;;  %v883_v38 = vrot.slane %v869_v32, %v2974_v26  ;;  %v884_v39 = vcombine.high %v876_v33, %v876_v33  ;;  %v912_v40 = vsel %vm911_vm3, %v876_v33, -inf }
 0x132   : > { %v902_v41 = vcombine.high %v900_v34, %v900_v34  ;;  %v947_v42 = vsel %vm911_vm3, %v901_v35, -inf  ;;  %v954_v43 = vsel %vm911_vm3, %v900_v34, -inf  ;;  %v913_v44 = vrot.slane %v912_v40, 4  ;;  %v1968_v34 = vld [vmem:[%s3298_s4 + $0x60] sm:$0xff]  ;;  %v1969_v35 = vld [vmem:[%s3298_s4 + $0x68] sm:$0xff] }
 0x133   : > { %v942_v45 = vmax.f32 %v940_v36, %v941_v37  ;;  %v948_v46 = vrot.slane %v947_v42, 4  ;;  %v955_v47 = vrot.slane %v954_v43, 4  ;;  %v885_v48 = vcombine.high %v883_v38, %v883_v38 }
 0x134   : > { %v961_v49 = vsel %vm911_vm3, %v902_v41, -inf  ;;  %v914_v50 = vmax.f32 %v912_v40, %v913_v44  ;;  %v919_v51 = vsel %vm911_vm3, %v884_v39, -inf  ;;  %v926_v52 = vsel %vm911_vm3, %v883_v38, -inf  ;;  %v1970_v44 = vld [vmem:[%s3298_s4 + $0x70] sm:$0xff] }
 0x135   : > { %v949_v53 = vmax.f32 %v947_v42, %v948_v46  ;;  %v956_v54 = vmax.f32 %v954_v43, %v955_v47  ;;  %v962_v55 = vrot.slane %v961_v49, 4  ;;  %v920_v57 = vrot.slane %v919_v51, 4 }
 0x136   : > { %v915_v56 = vrot.slane %v914_v50, 2  ;;  %v927_v58 = vrot.slane %v926_v52, 4  ;;  %v933_v59 = vsel %vm911_vm3, %v885_v48, -inf  ;;  %v943_v60 = vrot.slane %v942_v45, 2  ;;  %v1972_v48 = vld [vmem:[%s3298_s4 + $0x80] sm:$0xff] }
 0x137   : > { %v950_v62 = vrot.slane %v949_v53, 2  ;;  %v934_v63 = vrot.slane %v933_v59, 4  ;;  %v921_v1 = vmax.f32 %v919_v51, %v920_v57  ;;  %v963_v3 = vmax.f32 %v961_v49, %v962_v55  ;;  %v1973_v49 = vld [vmem:[%s3298_s4 + $0x88] sm:$0xff]  ;;  %v1974_v51 = vld [vmem:[%s3298_s4 + $0x90] sm:$0xff] }
 0x138   : > { %v916_v0 = vmax.f32 %v914_v50, %v915_v56  ;;  %v928_v2 = vmax.f32 %v926_v52, %v927_v58  ;;  %v957_v4 = vrot.slane %v956_v54, 2  ;;  %v944_v10 = vmax.f32 %v942_v45, %v943_v60  ;;  %v1971_v45 = vld [vmem:[%s3298_s4 + $0x78] sm:$0xff]  ;;  %v1977_v55 = vld [vmem:[%s3298_s4 + $0xa8] sm:$0xff]  ;;  %v1978_v57 = vld [vmem:[%s3298_s4 + $0xb0] sm:$0xff] }
 0x139   : > { %v935_v6 = vmax.f32 %v933_v59, %v934_v63  ;;  %v922_v7 = vrot.slane %v921_v1, 2  ;;  %v964_v9 = vrot.slane %v963_v3, 2  ;;  %v951_v12 = vmax.f32 %v949_v53, %v950_v62  ;;  %v1975_v52 = vld [vmem:[%s3298_s4 + $0x98] sm:$0xff]  ;;  %v1981_v60 = vld [vmem:[%s3299_s5 + $0x30] sm:$0xff]  ;;  %v1983_v63 = vld [vmem:[%s3299_s5 + $0x40] sm:$0xff] }
 0x13a   : > { %v929_v8 = vrot.slane %v928_v2, 2  ;;  %v917_v13 = vrot.slane %v916_v0, 1  ;;  %v958_v16 = vmax.f32 %v956_v54, %v957_v4  ;;  %v945_v21 = vrot.slane %v944_v10, 1  ;;  %v1976_v54 = vld [vmem:[%s3298_s4 + $0xa0] sm:$0xff]  ;;  %v1979_v58 = vld [vmem:[%s3298_s4 + $0xb8] sm:$0xff] }
 0x13b   : > { %v936_v11 = vrot.slane %v935_v6, 2  ;;  %v923_v14 = vmax.f32 %v921_v1, %v922_v7  ;;  %v965_v20 = vmax.f32 %v963_v3, %v964_v9  ;;  %v952_v23 = vrot.slane %v951_v12, 1  ;;  %v1982_v62 = vld [vmem:[%s3299_s5 + $0x38] sm:$0xff]  ;;  %v1984_v1 = vld [vmem:[%s3299_s5 + $0x48] sm:$0xff]  ;;  %v1985_v3 = vld [vmem:[%s3299_s5 + $0x50] sm:$0xff] }
 0x13c   : > { %v930_v15 = vmax.f32 %v928_v2, %v929_v8  ;;  %v918_v24 = vmax.f32 %v916_v0, %v917_v13  ;;  %v959_v29 = vrot.slane %v958_v16, 1  ;;  %v946_v32 = vmax.f32 %v944_v10, %v945_v21  ;;  %v1986_v4 = vld [vmem:[%s3299_s5 + $0x58] sm:$0xff]  ;;  %v1159_v9 = vld [vmem:[%s3299_s5] sm:$0xff]  ;;  %v1160_v10 = vld [vmem:[%s3299_s5 + $0x8] sm:$0xff] }
 0x13d   : > { %v937_v17 = vmax.f32 %v935_v6, %v936_v11  ;;  %v924_v18 = vrot.slane %v923_v14, 1  ;;  %v966_v31 = vrot.slane %v965_v20, 1  ;;  %v953_v36 = vmax.f32 %v951_v12, %v952_v23  ;;  %v1990_v23 = vld [vmem:[%s3299_s5 + $0x68] sm:$0xff] }
 0x13e   : > { %v931_v19 = vrot.slane %v930_v15, 1  ;;  %v960_v38 = vmax.f32 %v958_v16, %v959_v29  ;;  %v2483_v42 = vpack.c.bf16 %v1969_v35, %v1968_v34  ;;  %v2486_v47 = vpack.c.bf16 %v1971_v45, %v1970_v44  ;;  %v1161_v16 = vld [vmem:[%s3299_s5 + $0x10] sm:$0xff]  ;;  %v1993_v29 = vld [vmem:[%s3299_s5 + $0x80] sm:$0xff] }
 0x13f   : > { %v938_v22 = vrot.slane %v937_v17, 1  ;;  %v925_v25 = vmax.f32 %v923_v14, %v924_v18  ;;  %v967_v40 = vmax.f32 %v965_v20, %v966_v31  ;;  %v2489_v50 = vpack.c.bf16 %v1973_v49, %v1972_v48  ;;  %v1164_v20 = vld [vmem:[%s3299_s5 + $0x28] sm:$0xff]  ;;  %v2007_v49 = vld [vmem:[%s3299_s5 + $0xe0] sm:$0xff] }
 0x140   : > { %v932_v27 = vmax.f32 %v930_v15, %v931_v19  ;;  %v2492_v53 = vpack.c.bf16 %v1975_v52, %v1974_v51  ;;  %v2495_v56 = vpack.c.bf16 %v1977_v55, %v1976_v54  ;;  %v2498_v59 = vpack.c.bf16 %v1979_v58, %v1978_v57  ;;  %v1163_v19 = vld [vmem:[%s3299_s5 + $0x20] sm:$0xff]  ;;  %v1605_v54 = vld [vmem:[%s3302_s8 + $0x8] sm:$0xff]  ;;  %v1607_v57 = vld [vmem:[%s3302_s8 + $0x18] sm:$0xff] }
 0x141   : > { %v939_v28 = vmax.f32 %v937_v17, %v938_v22  ;;  %v989_v30 = vsel %vm988_vm4, %v925_v25, %v918_v24  ;;  %v2501_v0 = vpack.c.bf16 %v1982_v62, %v1981_v60  ;;  %v2504_v2 = vpack.c.bf16 %v1984_v1, %v1983_v63  ;;  %v1162_v17 = vld [vmem:[%s3299_s5 + $0x18] sm:$0xff]  ;;  %v1989_v22 = vld [vmem:[%s3299_s5 + $0x60] sm:$0xff]  ;;  %v1991_v25 = vld [vmem:[%s3299_s5 + $0x70] sm:$0xff] }
 0x142   : > { %v991_v33 = vsel %vm990_vm5, %v932_v27, %v989_v30  ;;  %v2507_v6 = vpack.c.bf16 %v1986_v4, %v1985_v3  ;;  %v2510_v14 = vpack.c.bf16 %v1160_v10, %v1159_v9  ;;  %v2513_v18 = vpack.c.bf16 %v1162_v17, %v1161_v16  ;;  %v1992_v27 = vld [vmem:[%s3299_s5 + $0x78] sm:$0xff]  ;;  %v1994_v30 = vld [vmem:[%s3299_s5 + $0x88] sm:$0xff]  ;;  %v1610_v63 = vld [vmem:[%s3302_s8 + $0x30] sm:$0xff] }
 0x143   : > { %v993_v37 = vsel %vm992_vm6, %v939_v28, %v991_v33  ;;  %v2516_v21 = vpack.c.bf16 %v1164_v20, %v1163_v19  ;;  %v2519_v24 = vpack.c.bf16 %v1990_v23, %v1989_v22  ;;  %v2522_v28 = vpack.c.bf16 %v1992_v27, %v1991_v25  ;;  %v1997_v33 = vld [vmem:[%s3299_s5 + $0x98] sm:$0xff]  ;;  %v1609_v60 = vld [vmem:[%s3302_s8 + $0x28] sm:$0xff]  ;;  %v2011_v4 = vld [vmem:[%s3301_s7] ss:$0 sm:$0xff] }
 0x144   : > { %v995_v39 = vsel %vm994_vm7, %v946_v32, %v993_v37  ;;  %v2525_v31 = vpack.c.bf16 %v1994_v30, %v1993_v29  ;;  %v1996_v32 = vld [vmem:[%s3299_s5 + $0x90] sm:$0xff]  ;;  %v1999_v37 = vld [vmem:[%s3299_s5 + $0xa8] sm:$0xff]  ;;  %v2013_v23 = vld [vmem:[%s3302_s8 + $0x40] sm:$0xff] }
 0x145   : > { %v997_v41 = vsel %vm996_vm8, %v953_v36, %v995_v39  ;;  %v2528_v34 = vpack.c.bf16 %v1997_v33, %v1996_v32  ;;  %v1998_v36 = vld [vmem:[%s3299_s5 + $0xa0] sm:$0xff]  ;;  %v2000_v39 = vld [vmem:[%s3299_s5 + $0xb0] sm:$0xff]  ;;  %v2016_v30 = vld [vmem:[%s3302_s8 + $0x58] sm:$0xff] }
 0x146   : > { %v999_v43 = vsel %vm998_vm9, %v960_v38, %v997_v41  ;;  %v2531_v38 = vpack.c.bf16 %v1999_v37, %v1998_v36  ;;  %v2015_v29 = vld [vmem:[%s3302_s8 + $0x50] sm:$0xff]  ;;  %v2017_v33 = vld [vmem:[%s3302_s8 + $0x60] sm:$0xff]  ;;  %v2020_v37 = vld [vmem:[%s3302_s8 + $0x78] sm:$0xff] }
 0x147   : > { %v1001_v46 = vsel %vm1000_vm10, %v967_v40, %v999_v43  ;;  %v2001_v40 = vld [vmem:[%s3299_s5 + $0xb8] sm:$0xff]  ;;  %v2004_v43 = vld [vmem:[%s3299_s5 + $0xc8] sm:$0xff]  ;;  %v2561_v32 = vpack.c.bf16 %v2016_v30, %v2015_v29  ;;  %v2019_v36 = vld [vmem:[%s3302_s8 + $0x70] sm:$0xff] }
 0x148   : > { %2251 = vmatmul.mubr.msk.f32.vlgmr.msra.gmra.mrb[0].mxu1 %vm1002_vm11, %v1001_v46  ;;  %v2534_v41 = vpack.c.bf16 %v2001_v40, %v2000_v39  ;;  %v1776_v39 = vld [vmem:[%s3303_s9] sm:$0xff]  ;;  %v1777_v40 = vld [vmem:[%s3303_s9 + $0x8] sm:$0xff] }
 0x149   : > { %2484 = vmatpush3.bf16.msra.mxu1 %v2483_v42  ;;  %2277 = vmatprep.mubr.msk.f32.mxu1 %vm2700_vm2, %v2698_v5  ;;  %v2003_v42 = vld [vmem:[%s3299_s5 + $0xc0] sm:$0xff] }
 0x14a   : > { %2485 = vmatprep.subr.bf16.mxu1 %v2699_v61  ;;  %v2537_v44 = vpack.c.bf16 %v2004_v43, %v2003_v42  ;;  %v1778_v42 = vld [vmem:[%s3303_s9 + $0x10] sm:$0xff] }
 0x14d   : > { %2487 = vmatpush3.bf16.msra.mxu1 %v2486_v47  ;;  %v2006_v47 = vld [vmem:[%s3299_s5 + $0xd8] sm:$0xff] }
 0x14e   : > { %2488 = vmatprep.subr.bf16.mxu1 %v2699_v61 }
 0x151   : > { %2490 = vmatpush3.bf16.msra.mxu1 %v2489_v50  ;;  %v2008_v50 = vld [vmem:[%s3299_s5 + $0xe8] sm:$0xff] }
 0x152   : > { %2491 = vmatprep.subr.bf16.mxu1 %v2699_v61  ;;  %v2543_v51 = vpack.c.bf16 %v2008_v50, %v2007_v49 }
 0x155   : > { %2493 = vmatpush3.bf16.msra.mxu1 %v2492_v53  ;;  %v1604_v53 = vld [vmem:[%s3302_s8] sm:$0xff] }
 0x156   : > { %2494 = vmatprep.subr.bf16.mxu1 %v2699_v61  ;;  %v2546_v55 = vpack.c.bf16 %v1605_v54, %v1604_v53 }
 0x158   : > { %2547 = vmatpush3.bf16.msra.mxu0 %v2546_v55  ;;  %v1780_v55 = vld [vmem:[%s3304_s10] sm:$0x1] }
 0x159   : > { %2496 = vmatpush3.bf16.msra.mxu1 %v2495_v56  ;;  %2548 = vmatprep.subr.bf16.mxu0 %v2699_v61  ;;  %v1606_v56 = vld [vmem:[%s3302_s8 + $0x10] sm:$0xff] }
 0x15a   : > { %2497 = vmatprep.subr.bf16.mxu1 %v2699_v61  ;;  %v2549_v58 = vpack.c.bf16 %v1607_v57, %v1606_v56 }
 0x15c   : > { %2550 = vmatpush3.bf16.msra.mxu0 %v2549_v58 }
 0x15d   : > { %2499 = vmatpush3.bf16.msra.mxu1 %v2498_v59  ;;  %2551 = vmatprep.subr.bf16.mxu0 %v2699_v61  ;;  %v1608_v59 = vld [vmem:[%s3302_s8 + $0x20] sm:$0xff] }
 0x15e   : > { %2500 = vmatprep.subr.bf16.mxu1 %v2699_v61  ;;  %v2552_v62 = vpack.c.bf16 %v1609_v60, %v1608_v59 }
 0x160   : > { %2278 = vmatmul.mubr.msk.f32.vlgmr.msra.gmra.mrb[2].mxu1 %vm1002_vm11, %v1001_v46  ;;  %v2005_v46 = vld [vmem:[%s3299_s5 + $0xd0] sm:$0xff]  ;;  %2553 = vmatpush3.bf16.msra.mxu0 %v2552_v62 }
 0x161   : > { %2292 = vmatprep.mubr.msk.f32.mxu1 %vm2700_vm2, %v2698_v5  ;;  %2502 = vmatpush3.bf16.msra.mxu1 %v2501_v0  ;;  %v2540_v48 = vpack.c.bf16 %v2006_v47, %v2005_v46  ;;  %v1611_v0 = vld [vmem:[%s3302_s8 + $0x38] sm:$0xff] }
 0x162   : > { %2503 = vmatprep.subr.bf16.mxu1 %v2699_v61  ;;  %2554 = vmatprep.subr.bf16.mxu0 %v2699_v61  ;;  %v2555_v1 = vpack.c.bf16 %v1611_v0, %v1610_v63 }
 0x164   : > { %2556 = vmatpush3.bf16.msra.mxu0 %v2555_v1 }
 0x165   : > { %2505 = vmatpush3.bf16.msra.mxu1 %v2504_v2  ;;  %2557 = vmatprep.subr.bf16.mxu0 %v2699_v61  ;;  %v2010_v2 = vld [vmem:[%s3300_s6] ss:$0 sm:$0xff] }
 0x166   : > { %2506 = vmatprep.subr.bf16.mxu1 %v2699_v61 }
 0x169   : > { %2508 = vmatpush3.bf16.msra.mxu1 %v2507_v6 }
 0x16a   : > { %2509 = vmatprep.subr.bf16.mxu1 %v2699_v61 }
 0x21b   : > { %v1071_v7 = vpop.f32.mrb[0].mxu1 }
 0x21c   : > { %v2252_v8 = vpop.f32.mrb[1].mxu1 }
 0x233   : > { %v1154_v11 = vpop.f32.mrb[2].mxu1 }
 0x234   : > { %v3064_v12 = vmax.f32 %v1071_v7, %v1154_v11  ;;  %v2279_v13 = vpop.f32.mrb[3].mxu1 }
 0x236   : > { %v1173_v15 = vrot.slane %v3064_v12, 1  ;;  %v1325_v35 = vrot.slane %v3064_v12, 2  ;;  %v1406_v45 = vrot.slane %v3064_v12, 3  ;;  %v1487_v52 = vrot.slane %v3064_v12, 4 }
 0x238   : > { %2293 = vmatmul.mubr.msk.f32.vlgmr.msra.gmra.mrb[4].mxu1 %vm389_vm1, %v1173_v15 }
 0x239   : > { %2511 = vmatpush3.bf16.msra.mxu1 %v2510_v14  ;;  %2307 = vmatprep.mubr.msk.f32.mxu1 %vm2700_vm2, %v2698_v5 }
 0x23a   : > { %2512 = vmatprep.subr.bf16.mxu1 %v2699_v61 }
 0x23d   : > { %2514 = vmatpush3.bf16.msra.mxu1 %v2513_v18 }
 0x23e   : > { %2515 = vmatprep.subr.bf16.mxu1 %v2699_v61 }
 0x241   : > { %2517 = vmatpush3.bf16.msra.mxu1 %v2516_v21 }
 0x242   : > { %2518 = vmatprep.subr.bf16.mxu1 %v2699_v61 }
 0x244   : > { %2308 = vmatmul.mubr.msk.f32.vlgmr.msra.gmra.mrb[4].mxu1 %vm389_vm1, %v3064_v12 }
 0x245   : > { %2520 = vmatpush3.bf16.msra.mxu1 %v2519_v24  ;;  %2322 = vmatprep.mubr.msk.f32.mxu1 %vm2700_vm2, %v2698_v5 }
 0x246   : > { %2521 = vmatprep.subr.bf16.mxu1 %v2699_v61 }
 0x249   : > { %2523 = vmatpush3.bf16.msra.mxu1 %v2522_v28 }
 0x24a   : > { %2524 = vmatprep.subr.bf16.mxu1 %v2699_v61 }
 0x24d   : > { %2526 = vmatpush3.bf16.msra.mxu1 %v2525_v31 }
 0x24e   : > { %2527 = vmatprep.subr.bf16.mxu1 %v2699_v61 }
 0x250   : > { %2323 = vmatmul.mubr.msk.f32.vlgmr.msra.gmra.mrb[4].mxu1 %vm389_vm1, %v1325_v35 }
 0x251   : > { %2529 = vmatpush3.bf16.msra.mxu1 %v2528_v34  ;;  %2337 = vmatprep.mubr.msk.f32.mxu1 %vm2700_vm2, %v2698_v5  ;;  %v2018_v34 = vld [vmem:[%s3302_s8 + $0x68] sm:$0xff] }
 0x252   : > { %2530 = vmatprep.subr.bf16.mxu1 %v2699_v61  ;;  %v2564_v35 = vpack.c.bf16 %v2018_v34, %v2017_v33 }
 0x255   : > { %2532 = vmatpush3.bf16.msra.mxu1 %v2531_v38  ;;  %v2567_v38 = vpack.c.bf16 %v2020_v37, %v2019_v36 }
 0x256   : > { %2533 = vmatprep.subr.bf16.mxu1 %v2699_v61 }
 0x259   : > { %2535 = vmatpush3.bf16.msra.mxu1 %v2534_v41  ;;  %v2570_v41 = vpack.c.bf16 %v1777_v40, %v1776_v39 }
 0x25a   : > { %2536 = vmatprep.subr.bf16.mxu1 %v2699_v61 }
 0x25c   : > { %2338 = vmatmul.mubr.msk.f32.vlgmr.msra.gmra.mrb[4].mxu1 %vm389_vm1, %v1406_v45 }
 0x25d   : > { %2538 = vmatpush3.bf16.msra.mxu1 %v2537_v44  ;;  %2352 = vmatprep.mubr.msk.f32.mxu1 %vm2700_vm2, %v2698_v5 }
 0x25e   : > { %2539 = vmatprep.subr.bf16.mxu1 %v2699_v61 }
 0x261   : > { %2541 = vmatpush3.bf16.msra.mxu1 %v2540_v48 }
 0x262   : > { %2542 = vmatprep.subr.bf16.mxu1 %v2699_v61 }
 0x265   : > { %2544 = vmatpush3.bf16.msra.mxu1 %v2543_v51 }
 0x268   : > { %2353 = vmatmul.mubr.msk.f32.vlgmr.msra.gmra.mrb[4].mxu1 %vm389_vm1, %v1487_v52 }
 0x33b   : > { %v1556_v3 = vpop.f32.mrb[4].mxu1 }
 0x33c   : > { %v1568_v6 = vmul.f32 %v2010_v2, %v1556_v3  ;;  %v2354_v7 = vpop.f32.mrb[5].mxu1 }
 0x33e   : > { %v1576_v8 = vadd.f32 %v2011_v4, %v1568_v6 }
 0x340   : > { %v1577_v9 = vmax.f32 %v1576_v8, 0.0 }
 0x342   : > { %v1585_v10 = vrot.slane %v1577_v9, %v2974_v26  ;;  %v2014_v26 = vld [vmem:[%s3302_s8 + $0x48] sm:$0xff] }
 0x343   : > { %v2558_v28 = vpack.c.bf16 %v2014_v26, %v2013_v23 }
 0x344   : > { %v1586_v11 = vcombine.high %v1585_v10, %v1585_v10  ;;  %v1590_v12 = vsel %vm1589_vm12, %v1585_v10, -inf }
 0x345   : > { %v1591_v13 = vrot.slane %v1590_v12, 4 }
 0x346   : > { %v1597_v14 = vsel %vm1589_vm12, %v1586_v11, -inf }
 0x347   : > { %v1592_v15 = vmax.f32 %v1590_v12, %v1591_v13  ;;  %v1598_v16 = vrot.slane %v1597_v14, 4 }
 0x349   : > { %v1593_v17 = vrot.slane %v1592_v15, 2  ;;  %v1599_v18 = vmax.f32 %v1597_v14, %v1598_v16 }
 0x34b   : > { %v1594_v19 = vmax.f32 %v1592_v15, %v1593_v17  ;;  %v1600_v20 = vrot.slane %v1599_v18, 2 }
 0x34d   : > { %v1595_v21 = vrot.slane %v1594_v19, 1  ;;  %v1601_v22 = vmax.f32 %v1599_v18, %v1600_v20 }
 0x34f   : > { %v1602_v24 = vrot.slane %v1601_v22, 1  ;;  %v1596_v25 = vmax.f32 %v1594_v19, %v1595_v21 }
 0x351   : > { %v1603_v27 = vmax.f32 %v1601_v22, %v1602_v24 }
 0x353   : > { %v1614_v31 = vsel %vm988_vm4, %v1603_v27, %v1596_v25 }
 0x354   : > { %2372 = vmatmul.mubr.msk.f32.vlgmr.msra.gmra.mrb[2].mxu0 %vm1615_vm13, %v1614_v31 }
 0x355   : > { %2559 = vmatpush3.bf16.msra.mxu0 %v2558_v28  ;;  %2390 = vmatprep.mubr.msk.f32.mxu0 %vm2700_vm2, %v2698_v5 }
 0x356   : > { %2560 = vmatprep.subr.bf16.mxu0 %v2699_v61 }
 0x359   : > { %2562 = vmatpush3.bf16.msra.mxu0 %v2561_v32 }
 0x35a   : > { %2563 = vmatprep.subr.bf16.mxu0 %v2699_v61 }
 0x35d   : > { %2565 = vmatpush3.bf16.msra.mxu0 %v2564_v35 }
 0x35e   : > { %2566 = vmatprep.subr.bf16.mxu0 %v2699_v61 }
 0x361   : > { %2568 = vmatpush3.bf16.msra.mxu0 %v2567_v38 }
 0x362   : > { %2569 = vmatprep.subr.bf16.mxu0 %v2699_v61 }
 0x364   : > { %2391 = vmatmul.mubr.msk.f32.vlgmr.msra.gmra.mrb[4].mxu0 %vm1615_vm13, %v1614_v31 }
 0x365   : > { %2401 = vmatprep.mubr.msk.f32.mxu0 %vm2700_vm2, %v2698_v5  ;;  %2571 = vmatpush3.bf16.msra.mxu0 %v2570_v41  ;;  %v1779_v5 = vld [vmem:[%s3303_s9 + $0x18] sm:$0xff] }
 0x366   : > { %2572 = vmatprep.subr.bf16.mxu0 %v2699_v61  ;;  %v2573_v43 = vpack.c.bf16 %v1779_v5, %v1778_v42 }
 0x369   : > { %2574 = vmatpush3.bf16.msra.mxu0 %v2573_v43 }
 0x427   : > { %v1684_v44 = vpop.f32.mrb[2].mxu0 }
 0x428   : > { %v2373_v45 = vpop.f32.mrb[3].mxu0 }
 0x437   : > { %v1763_v46 = vpop.f32.mrb[4].mxu0 }
 0x438   : > { %v1767_v47 = vmax.f32 %v1684_v44, %v1763_v46  ;;  %v2392_v48 = vpop.f32.mrb[5].mxu0 }
 0x43a   : > { %v1769_v49 = vsel %vm1768_vm14, %v1767_v47, 0.0 }
 0x43b   : > { %v1770_v61 = vrot.slane %v1769_v49, 4 }
 0x43d   : > { %v1771_v50 = vadd.f32 %v1770_v61, %v1769_v49 }
 0x43f   : > { %v1772_v51 = vrot.slane %v1771_v50, 2 }
 0x441   : > { %v1773_v52 = vadd.f32 %v1772_v51, %v1771_v50 }
 0x443   : > { %v1774_v53 = vrot.slane %v1773_v52, 1 }
 0x445   : > { %v1775_v54 = vadd.f32 %v1774_v53, %v1773_v52 }
 0x447   : > { %2402 = vmatmul.mubr.msk.f32.vlgmr.msra.gmra.mrb[6].mxu0 %vm1781_vm15, %v1775_v54 }
 0x51a   : > { %v1851_v56 = vpop.f32.mrb[6].mxu0 }
 0x51b   : > { %v1852_v57 = vadd.f32 %v1851_v56, %v1780_v55  ;;  %v2403_v58 = vpop.f32.mrb[7].mxu0 }
 0x51d   : > { %1856 = vst.msk [vmem:[%s378_s15] sm:$0x1] %vm1855_vm0, %v1852_v57 }
 0x51e   : > { %2647 = shalt.err (!%p2644_p3)
}
 0x51f   : > { %s2648_s12 = scalar_lea.hbm %s3252_s25, 16  ;;  %s2652_s22 = scalar_lea.hbm %s3305_s11, 32 }
 0x520   : > { %p2649_p4 = scmp.ne.s32.totalorder %s3252_s25, %s2648_s12  ;;  %p2653_p9 = scmp.lt.u32.totalorder %s3252_s25, %s3305_s11 }
 0x521   : > { %p2654_p10 = scmp.lt.u32.totalorder %s2652_s22, %s2648_s12  ;;  %p2656_p12 = scmp.lt.u32.totalorder %s2648_s12, %s3252_s25 }
 0x522   : > { %p2650_p7 = pnand %p2649_p4, %p2801_p5 }
 0x523   : > { %p2655_p11 = por %p2654_p10, %p2653_p9 }
 0x524   : > { %p2651_p8 = pneg %p2650_p7 }
 0x525   : > { %p2657_p13 = por %p2656_p12, %p2655_p11 }
 0x527   : > { %p2658_p0 = pnand %p2657_p13, %p2651_p8 }
 0x529   : > { %2661 = shalt.err (!%p2658_p0)
}
 0x52a   : > { %2591 = dma.vmem_to_hbm [thread:$0]  (%p2801_p5), %s3254_s16, 16, %s3252_s25, %s1858_s29  }
 0x52b PF: > { %p2597_p1 = scmp.ge.s32.totalorder %s2696_s20, 2  ;;  %s1882_s30 = sand.u32 1, %s2684_s17  }
 0x52c   : > { %s1883_s26 = scalar_lea.sflag [#allocation4], %s1882_s30 }
 0x52d   : > { %p2594_p2 = pnand %p2597_p1, %p2805_p6 }
 0x52f   : > { %2679 = dma.done.wait (!%p2594_p2), %s1883_s26, 16  }
 0x530   : > { %2681 = vsyncadd (!%p2594_p2), %s1883_s26, 4294967280  ;;  %s3309_s13 = sld [smem:[#allocation6_spill]]  ;;  %p21_p3 = scmp.ge.s32.totalorder %s2788_s23, 4  }
 0x531   : > { %s3310_s17 = smov %s2688_s18  ;;  %s3311_s18 = smov %s2692_s19 }
 0x532   : > { %s3313_s20 = smov %s2788_s23  ;;  %23 = sbr.rel (!%p21_p3) target bundleno = 3 (0x3), region = 109 }
 0x536   : > { %s3312_s19 = smov %s3309_s13 }
 0x539   :  { %1887 = vsyncpa [#allocation4], 1 }
 0x53a   :  { %1889 = vsyncpa [#allocation4 + $0x1], 1 }

</bundles_post_ra>
